<compile_context>
chip_gen: v7x
topology: tpu7x:2x2x1
jax: 0.10.0
libtpu: 0.0.40
codegen_flags: <defaults>
</compile_context>

<pallas_src>
import jax
import jax.numpy as jnp
from jax.experimental import pallas as pl
from jax.experimental.pallas import tpu as pltpu

IN_DIM = 28 * 28      # 784
OUT_DIM = 10
OUT_PAD = 128         # lane-dense padded output width
NEG_BIG = -1e30       # bias value for padded logit columns (exp -> 0)


def _net_kernel(x_ref, wf_ref, bf_ref, o_ref):
    # In-kernel cast: f32 tile -> bf16 feeding the MXU (VALU slots have slack).
    x = x_ref[...].astype(jnp.bfloat16)
    # (TB, 784) bf16 @ (784, 128) bf16 -> f32 accumulate, + f32 bias.
    logits = jnp.dot(x, wf_ref[...],
                     preferred_element_type=jnp.float32) + bf_ref[...]
    # Softmax over the feature axis, all in f32 (padded cols carry -1e30 -> 0).
    m = jnp.max(logits, axis=-1, keepdims=True)
    e = jnp.exp(logits - m)
    denom = jnp.sum(e, axis=-1, keepdims=True)
    probs = e * pl.reciprocal(denom, approx=True)
    o_ref[...] = probs.astype(o_ref.dtype)      # bf16 store (lane-dense, 128)


def _round_up(n, m):
    return ((n + m - 1) // m) * m


def _choose_tb(batch, tb_target):
    """Pick the batch tile: as large as tb_target, but always leaving >=2 grid
    steps when the batch allows it (so v7x can shard across both TCs), and a
    multiple of 8 sublanes."""
    half = _round_up(pl.cdiv(max(batch, 1), 2), 8)
    return max(8, min(tb_target, half))


def fuse_params(params):
    """Fold fc1..fc4 into a single (784, OUT_PAD) bf16 weight + f32 bias."""
    w1, b1 = params["w1"], params["b1"]
    w2, b2 = params["w2"], params["b2"]
    w3, b3 = params["w3"], params["b3"]
    w4, b4 = params["w4"], params["b4"]

    wf = w1 @ w2 @ w3 @ w4                                   # (784, 10) f32
    bf = ((b1 @ w2 + b2) @ w3 + b3) @ w4 + b4                # (1, 10)  f32

    wf_pad = jnp.zeros((IN_DIM, OUT_PAD), jnp.float32).at[:, :OUT_DIM].set(wf)
    bf_pad = jnp.full((1, OUT_PAD), NEG_BIG, jnp.float32).at[:, :OUT_DIM].set(bf)
    return wf_pad.astype(jnp.bfloat16), bf_pad                # weight bf16, bias f32


def net_forward(x, params, *, tb=1024):
    """x: (B, 784) float32. params: dict of per-layer weights/biases.
    Returns softmax probabilities of shape (B, 10), float32."""
    B = x.shape[0]
    wf, bf = fuse_params(params)

    tb = _choose_tb(B, tb)
    b_pad = _round_up(B, tb)
    if b_pad != B:
        x = jnp.pad(x, ((0, b_pad - B), (0, 0)))   # rare: tb is sized from B

    grid = (b_pad // tb,)
    out = pl.pallas_call(
        _net_kernel,
        out_shape=jax.ShapeDtypeStruct((b_pad, OUT_PAD), jnp.bfloat16),
        grid_spec=pltpu.PrefetchScalarGridSpec(
            num_scalar_prefetch=0,
            grid=grid,
            in_specs=[
                pl.BlockSpec((tb, IN_DIM), lambda i: (i, 0)),          # x tile (f32)
                pl.BlockSpec((IN_DIM, OUT_PAD), lambda i: (0, 0)),     # fused W (bf16)
                pl.BlockSpec((1, OUT_PAD), lambda i: (0, 0)),          # fused b (f32)
            ],
            out_specs=pl.BlockSpec((tb, OUT_PAD), lambda i: (i, 0)),
        ),
        compiler_params=pltpu.CompilerParams(
            dimension_semantics=("parallel",)),   # v7x: shard batch across TCs
    )(x, wf, bf)

    return out[:B, :OUT_DIM].astype(jnp.float32)


def init_params(key):
    """Deterministic PyTorch-style init: U(-1/sqrt(fan_in), 1/sqrt(fan_in))."""
    dims = [(IN_DIM, 64), (64, 64), (64, 64), (64, OUT_DIM)]
    params = {}
    for idx, (fan_in, fan_out) in enumerate(dims, start=1):
        key, kw, kb = jax.random.split(key, 3)
        bound = 1.0 / (fan_in ** 0.5)
        params[f"w{idx}"] = jax.random.uniform(
            kw, (fan_in, fan_out), jnp.float32, minval=-bound, maxval=bound)
        params[f"b{idx}"] = jax.random.uniform(
            kb, (1, fan_out), jnp.float32, minval=-bound, maxval=bound)
    return params


def reference_forward(x, params):
    """Pure f32 reference matching the PyTorch forward exactly."""
    h = x @ params["w1"] + params["b1"]
    h = h @ params["w2"] + params["b2"]
    h = h @ params["w3"] + params["b3"]
    logits = h @ params["w4"] + params["b4"]
    return jax.nn.softmax(logits, axis=1)


if __name__ == "__main__":
    key = jax.random.PRNGKey(0)
    kp, kx = jax.random.split(key)
    params = init_params(kp)

    B = 256                    # small batch -> tb clamps to 128, 2 grid steps
    x = jax.random.normal(kx, (B, IN_DIM), jnp.float32)

    out = net_forward(x, params)
    out = jax.block_until_ready(out)

    ref = reference_forward(x, params)
    assert out.shape == (B, OUT_DIM), f"bad shape {out.shape}"
    # bf16 matmul/output + approximate reciprocal -> relaxed tolerance vs f32.
    assert jnp.allclose(out, ref, atol=2e-2, rtol=2e-2), "mismatch vs reference"
    assert jnp.allclose(jnp.sum(out, axis=1), 1.0, atol=2e-2), \
        "softmax rows must sum to ~1"

    print("KERNEL_OK")
</pallas_src>

<mosaic_0001>
module attributes {stable_mosaic.version = 11 : i64} {
  func.func @_net_kernel(%arg0: i32, %arg1: memref<128x784xf32, #tpu.memory_space<vmem>>, %arg2: memref<784x128xbf16, #tpu.memory_space<vmem>>, %arg3: memref<1x128xf32, #tpu.memory_space<vmem>>, %arg4: memref<128x128xbf16, #tpu.memory_space<vmem>>) attributes {dimension_semantics = [#tpu.dimension_semantics<parallel>], iteration_bounds = array<i64: 2>, scalar_prefetch = 0 : i64, scratch_operands = 0 : i64, tpu.core_type = #tpu.core_type<tc>, window_params = [{transform_indices = @transform_0, window_bounds = array<i64: 128, 784>}, {pipeline_mode = #tpu.pipeline_mode<synchronous>, transform_indices = @transform_1, window_bounds = array<i64: 784, 128>}, {pipeline_mode = #tpu.pipeline_mode<synchronous>, transform_indices = @transform_2, window_bounds = array<i64: 1, 128>}, {transform_indices = @transform_3, window_bounds = array<i64: 128, 128>}]} {
    %c0 = arith.constant 0 : index
    %c0_0 = arith.constant 0 : index
    %0 = vector.load %arg1[%c0, %c0_0] : memref<128x784xf32, #tpu.memory_space<vmem>>, vector<128x784xf32>
    %1 = arith.truncf %0 : vector<128x784xf32> to vector<128x784xbf16>
    %c0_1 = arith.constant 0 : index
    %c0_2 = arith.constant 0 : index
    %2 = vector.load %arg2[%c0_1, %c0_2] : memref<784x128xbf16, #tpu.memory_space<vmem>>, vector<784x128xbf16>
    %cst = arith.constant dense<0.000000e+00> : vector<128x128xf32>
    %3 = tpu.matmul %1, %2, %cst {dimension_numbers = #tpu.dot_dimension_numbers<[1], [0], [0], [1], [0, 0, 1, 1], [], []>} : vector<128x784xbf16>, vector<784x128xbf16>, vector<128x128xf32> -> vector<128x128xf32>
    %c0_3 = arith.constant 0 : index
    %c0_4 = arith.constant 0 : index
    %4 = vector.load %arg3[%c0_3, %c0_4] : memref<1x128xf32, #tpu.memory_space<vmem>>, vector<1x128xf32>
    %5 = vector.broadcast %4 : vector<1x128xf32> to vector<128x128xf32>
    %6 = arith.addf %3, %5 : vector<128x128xf32>
    %cst_5 = arith.constant dense<0xFF800000> : vector<128xf32>
    %7 = vector.multi_reduction <maximumf>, %6, %cst_5 [1] : vector<128x128xf32> to vector<128xf32>
    %8 = vector.shape_cast %7 : vector<128xf32> to vector<128x1xf32>
    %9 = vector.broadcast %8 : vector<128x1xf32> to vector<128x128xf32>
    %10 = arith.subf %6, %9 : vector<128x128xf32>
    %11 = math.exp %10 : vector<128x128xf32>
    %cst_6 = arith.constant dense<0.000000e+00> : vector<128xf32>
    %12 = vector.multi_reduction <add>, %11, %cst_6 [1] : vector<128x128xf32> to vector<128xf32>
    %13 = vector.shape_cast %12 : vector<128xf32> to vector<128x1xf32>
    %14 = tpu.reciprocal %13 {approx = true} : vector<128x1xf32> -> vector<128x1xf32>
    %15 = vector.broadcast %14 : vector<128x1xf32> to vector<128x128xf32>
    %16 = arith.mulf %11, %15 : vector<128x128xf32>
    %17 = arith.truncf %16 : vector<128x128xf32> to vector<128x128xbf16>
    %c0_7 = arith.constant 0 : index
    %c0_8 = arith.constant 0 : index
    %18 = vector.load %arg4[%c0_7, %c0_8] : memref<128x128xbf16, #tpu.memory_space<vmem>>, vector<128x128xbf16>
    tpu.vector_store %arg4[%c0_7, %c0_8], %17 {strides = array<i32>} : memref<128x128xbf16, #tpu.memory_space<vmem>>, vector<128x128xbf16>,
    return
  }
  func.func @transform_0(%arg0: i32) -> (i32, i32) {
    %c0_i32 = arith.constant 0 : i32
    %c0_i32_0 = arith.constant 0 : i32
    return %arg0, %c0_i32 : i32, i32
  }
  func.func @transform_1(%arg0: i32) -> (i32, i32) {
    %c0_i32 = arith.constant 0 : i32
    %c0_i32_0 = arith.constant 0 : i32
    %c0_i32_1 = arith.constant 0 : i32
    return %c0_i32, %c0_i32_0 : i32, i32
  }
  func.func @transform_2(%arg0: i32) -> (i32, i32) {
    %c0_i32 = arith.constant 0 : i32
    %c0_i32_0 = arith.constant 0 : i32
    %c0_i32_1 = arith.constant 0 : i32
    return %c0_i32, %c0_i32_0 : i32, i32
  }
  func.func @transform_3(%arg0: i32) -> (i32, i32) {
    %c0_i32 = arith.constant 0 : i32
    %c0_i32_0 = arith.constant 0 : i32
    return %arg0, %c0_i32 : i32, i32
  }
}

</mosaic_0001>

<bundles_post_ra>
// kernel: tpu_custom_call.1
= control target key start
LH: loop header
LB: loop body
LE: loop exit
PB: predicated region body
PF: predicated region fallthrough
CT: control target
= control target key end

     0   :  { %8 = vsyncpa [#allocation3], 0  ;;  %s2663_s0 = inlined_call_operand.vmem [shape: f32[256,784], index: 0, kind: input, shape index: {}]   ;;  %s2664_s1 = inlined_call_operand.vmem [shape: bf16[784,128], index: 1, kind: input, shape index: {}]   ;;  %s2665_s2 = inlined_call_operand.vmem [shape: f32[1,128], index: 2, kind: input, shape index: {}]   ;;  %s2666_s3 = inlined_call_operand.hbm [shape: bf16[256,128], index: 3, kind: output, shape index: {}]  }
   0x1   :  { %10 = vsyncpa [#allocation3 + $0x1], 0  ;;  %s2083_s12 = smov 0   ;;  %s2085_s13 = smov 0  }
   0x2   :  { %s2087_s14 = smov 0   ;;  %s2089_s15 = smov 0  }
   0x3 LB: > { %s2104_s16 = sadd.s32 4294967295, %s2058_s15   ;;  %s1456_s17 = sadd.s32 4294967294, %s2058_s15   ;;  %s2058_s15 = sphi %s2089_s15, %s2672_s15   ;;  %s2054_s14 = sphi %s2087_s14, %s2671_s14   ;;  %s2050_s13 = sphi %s2085_s13, %s2670_s13   ;;  %s2046_s12 = sphi %s2083_s12, %s2669_s12  }
   0x4   : > { %s2108_s18 = sadd.s32 1, %s2058_s15   ;;  %s91_s19 = sadd.s32 1, %s2054_s14 }
   0x5   : > { %s88_s20 = ssub.s32 %s2058_s15, %s2108_s18  ;;  %p101_p0 = scmp.ne.s32.totalorder %s2054_s14, %s2050_s13 }
   0x6   : > { %p89_p1 = scmp.eq.s32.totalorder %s88_s20, 0  ;;  %p102_p2 = scmp.eq.s32.totalorder %s2104_s16, 1 }
   0x7   : > { %p107_p3 = scmp.ne.s32.totalorder %s2050_s13, %s2046_s12  ;;  %p108_p4 = scmp.eq.s32.totalorder %s1456_s17, 1 }
   0x8   : > { %s2119_s21 = scalar_select %p89_p1, %s2054_s14, %s91_s19  }
   0x9   : > { %p2121_p5 = por %p102_p2, %p101_p0  ;;  %p2125_p6 = por %p108_p4, %p107_p3 }
   0xa   : > { %p1459_p7 = scmp.ge.s32.totalorder %s2058_s15, 1  ;;  %p142_p8 = scmp.lt.s32.totalorder %s2058_s15, 3 }
   0xc   : > { %p143_p9 = pnand %p1459_p7, %p142_p8 }
   0xd   : > { %v1883_v0 = vld [vmem:[%s2664_s1 + $0x40] sm:$0xff] (!%p143_p9)   ;;  %v1887_v4 = vld [vmem:[%s2664_s1 + $0x48] sm:$0xff] (!%p143_p9)   ;;  %v1891_v8 = vld [vmem:[%s2664_s1 + $0x50] sm:$0xff] (!%p143_p9)   ;;  %s1461_s9 = sshll.u32 (!%p143_p9), %s2104_s16, 4  ;;  %vm743_vm0 = vcmask (!%p143_p9), 130048   ;;  %s1558_s26 = sshll.u32 (!%p143_p9), %s2104_s16, 10 }
   0xe   : > { %146 = sbr.rel (%p143_p9) target bundleno = 706 (0x2c2), region = 32  ;;  %v1884_v1 = vld [vmem:[%s2664_s1 + $0xc0] sm:$0xff] (!%p143_p9)   ;;  %1606 = vmatprep.subr.bf16.mxu0 (!%p143_p9), %v1883_v0  ;;  %v1888_v5 = vld [vmem:[%s2664_s1 + $0xc8] sm:$0xff] (!%p143_p9)   ;;  %v1892_v9 = vld [vmem:[%s2664_s1 + $0xd0] sm:$0xff] (!%p143_p9)   ;;  %p168_p10 = scmp.lt.s32.totalorder (!%p143_p9), %s1461_s9, 31 }
   0xf   : > { %v1885_v2 = vld [vmem:[%s2664_s1] sm:$0xff] (!%p143_p9)   ;;  %1670 = vmatprep.subr.bf16.mxu1 (!%p143_p9), %v1884_v1  ;;  %v1889_v6 = vld [vmem:[%s2664_s1 + $0x8] sm:$0xff] (!%p143_p9)   ;;  %v1893_v10 = vld [vmem:[%s2664_s1 + $0x10] sm:$0xff] (!%p143_p9)   ;;  %s2615_s30 = scalar_lea.hbm (!%p143_p9), %s2666_s3, %s1558_s26  ;;  %s2060_s5 = smov (!%p143_p9), [#allocation2]  }
  0x10   : > { %v1886_v3 = vld [vmem:[%s2664_s1 + $0x80] sm:$0xff] (!%p143_p9)   ;;  %1607 = vmatpush3.bf16.msra.mxu0 (!%p143_p9), %v1885_v2  ;;  %v1890_v7 = vld [vmem:[%s2664_s1 + $0x88] sm:$0xff] (!%p143_p9)   ;;  %v1894_v11 = vld [vmem:[%s2664_s1 + $0x90] sm:$0xff] (!%p143_p9)  }
  0x11   : > { %1671 = vmatpush3.bf16.msra.mxu1 (!%p143_p9), %v1886_v3  ;;  %1608 = vmatprep.subr.bf16.mxu0 (!%p143_p9), %v1887_v4  ;;  %v1895_v12 = vld [vmem:[%s2664_s1 + $0x58] sm:$0xff] (!%p143_p9)   ;;  %v1899_v16 = vld [vmem:[%s2664_s1 + $0x60] sm:$0xff] (!%p143_p9)   ;;  %v1903_v20 = vld [vmem:[%s2664_s1 + $0x68] sm:$0xff] (!%p143_p9)  }
  0x12   : > { %1672 = vmatprep.subr.bf16.mxu1 (!%p143_p9), %v1888_v5  ;;  %v1896_v13 = vld [vmem:[%s2664_s1 + $0xd8] sm:$0xff] (!%p143_p9)   ;;  %v1900_v17 = vld [vmem:[%s2664_s1 + $0xe0] sm:$0xff] (!%p143_p9)   ;;  %v1904_v21 = vld [vmem:[%s2664_s1 + $0xe8] sm:$0xff] (!%p143_p9)  }
  0x13   : > { %v1897_v14 = vld [vmem:[%s2664_s1 + $0x18] sm:$0xff] (!%p143_p9)   ;;  %v1901_v18 = vld [vmem:[%s2664_s1 + $0x20] sm:$0xff] (!%p143_p9)   ;;  %v1905_v22 = vld [vmem:[%s2664_s1 + $0x28] sm:$0xff] (!%p143_p9)  }
  0x14   : > { %1609 = vmatpush3.bf16.msra.mxu0 (!%p143_p9), %v1889_v6  ;;  %v1898_v15 = vld [vmem:[%s2664_s1 + $0x98] sm:$0xff] (!%p143_p9)   ;;  %v1902_v19 = vld [vmem:[%s2664_s1 + $0xa0] sm:$0xff] (!%p143_p9)   ;;  %v1906_v23 = vld [vmem:[%s2664_s1 + $0xa8] sm:$0xff] (!%p143_p9)  }
  0x15   : > { %1673 = vmatpush3.bf16.msra.mxu1 %v1890_v7  ;;  %1610 = vmatprep.subr.bf16.mxu0 %v1891_v8  ;;  %s2674_s9 = smov (!%p168_p10, %s1461_s9), 31  ;;  %v1907_v24 = vld [vmem:[%s2664_s1 + $0x70] sm:$0xff]   ;;  %v1911_v28 = vld [vmem:[%s2664_s1 + $0x78] sm:$0xff]   ;;  %v1915_v44 = vld [vmem:[%s2664_s1 + $0x140] sm:$0xff]  }
  0x16   : > { %1674 = vmatprep.subr.bf16.mxu1 %v1892_v9  ;;  %v1908_v25 = vld [vmem:[%s2664_s1 + $0xf0] sm:$0xff]   ;;  %s1841_s24 = smul.u32 56, %s2674_s9  ;;  %v1912_v29 = vld [vmem:[%s2664_s1 + $0xf8] sm:$0xff]   ;;  %v1916_v45 = vld [vmem:[%s2664_s1 + $0x100] sm:$0xff]   ;;  %s2000_s9 = sshll.u32 %s2060_s5, 4  ;;  %s2001_s9 = int_to_ptr.vmem [resolvable:$false] %s2000_s9 }
  0x17   : > { %v1909_v26 = vld [vmem:[%s2664_s1 + $0x30] sm:$0xff]   ;;  %v1913_v30 = vld [vmem:[%s2664_s1 + $0x38] sm:$0xff]   ;;  %v1917_v57 = vld [vmem:[%s2664_s1 + $0x148] sm:$0xff]   ;;  %s2002_s6 = scalar_lea.vmem %s2001_s9, 2048 }
  0x18   : > { %1611 = vmatpush3.bf16.msra.mxu0 %v1893_v10  ;;  %v1910_v27 = vld [vmem:[%s2664_s1 + $0xb0] sm:$0xff]   ;;  %s2225_s7 = scalar_lea.vmem %s2663_s0, %s1841_s24  ;;  %v1914_v31 = vld [vmem:[%s2664_s1 + $0xb8] sm:$0xff]   ;;  %v1918_v59 = vld [vmem:[%s2664_s1 + $0x108] sm:$0xff]  }
  0x19   : > { %1675 = vmatpush3.bf16.msra.mxu1 %v1894_v11  ;;  %1612 = vmatprep.subr.bf16.mxu0 %v1895_v12  ;;  %v177_v32 = vld [vmem:[%s2225_s7 + $0x8] sm:$0xff]  ;;  %v184_v33 = vld [vmem:[%s2225_s7 + $0x40] sm:$0xff]  ;;  %v179_v34 = vld [vmem:[%s2225_s7 + $0x18] sm:$0xff] }
  0x1a   : > { %1676 = vmatprep.subr.bf16.mxu1 %v1896_v13  ;;  %v289_v35 = vpack.c.bf16 %v184_v33, %v177_v32  ;;  %v186_v36 = vld [vmem:[%s2225_s7 + $0x50] sm:$0xff]  ;;  %v176_v37 = vld [vmem:[%s2225_s7] sm:$0xff]  ;;  %v183_v38 = vld [vmem:[%s2225_s7 + $0x38] sm:$0xff] }
  0x1b   : > { %v291_v39 = vpack.c.bf16 %v186_v36, %v179_v34  ;;  %v288_v40 = vpack.c.bf16 %v183_v38, %v176_v37  ;;  %v178_v41 = vld [vmem:[%s2225_s7 + $0x10] sm:$0xff]  ;;  %v185_v42 = vld [vmem:[%s2225_s7 + $0x48] sm:$0xff]  ;;  %v191_v46 = vld [vmem:[%s2225_s7 + $0x78] sm:$0xff] }
  0x1c   : > { %1613 = vmatpush3.bf16.msra.mxu0 %v1897_v14  ;;  %800 = vmatprep.mubr.bf16.mxu0 %v289_v35  ;;  %v290_v43 = vpack.c.bf16 %v185_v42, %v178_v41  ;;  %v198_v47 = vld [vmem:[%s2225_s7 + $0xb0] sm:$0xff]  ;;  %v193_v48 = vld [vmem:[%s2225_s7 + $0x88] sm:$0xff]  ;;  %v200_v49 = vld [vmem:[%s2225_s7 + $0xc0] sm:$0xff] }
  0x1d   : > { %1677 = vmatpush3.bf16.msra.mxu1 %v1898_v15  ;;  %1614 = vmatprep.subr.bf16.mxu0 %v1899_v16  ;;  %v296_v50 = vpack.c.bf16 %v198_v47, %v191_v46  ;;  %v298_v51 = vpack.c.bf16 %v200_v49, %v193_v48  ;;  %v190_v52 = vld [vmem:[%s2225_s7 + $0x70] sm:$0xff]  ;;  %v197_v53 = vld [vmem:[%s2225_s7 + $0xa8] sm:$0xff]  ;;  %v192_v54 = vld [vmem:[%s2225_s7 + $0x80] sm:$0xff] }
  0x1e   : > { %1678 = vmatprep.subr.bf16.mxu1 %v1900_v17  ;;  %897 = vmatprep.mubr.bf16.mxu1 %v291_v39  ;;  %v199_v55 = vld [vmem:[%s2225_s7 + $0xb8] sm:$0xff]  ;;  %v295_v56 = vpack.c.bf16 %v197_v53, %v190_v52  ;;  %v205_v60 = vld [vmem:[%s2225_s7 + $0xe8] sm:$0xff]  ;;  %v212_v61 = vld [vmem:[%s2225_s7 + $0x120] sm:$0xff] }
  0x1f   : > { %v297_v58 = vpack.c.bf16 %v199_v55, %v192_v54  ;;  %v303_v62 = vpack.c.bf16 %v212_v61, %v205_v60  ;;  %v207_v63 = vld [vmem:[%s2225_s7 + $0xf8] sm:$0xff]  ;;  %v214_v0 = vld [vmem:[%s2225_s7 + $0x130] sm:$0xff]  ;;  %v204_v2 = vld [vmem:[%s2225_s7 + $0xe0] sm:$0xff] }
  0x20   : > { %1615 = vmatpush3.bf16.msra.mxu0 %v1901_v18  ;;  %v305_v1 = vpack.c.bf16 %v214_v0, %v207_v63  ;;  %v211_v3 = vld [vmem:[%s2225_s7 + $0x118] sm:$0xff]  ;;  %v206_v4 = vld [vmem:[%s2225_s7 + $0xf0] sm:$0xff]  ;;  %v213_v7 = vld [vmem:[%s2225_s7 + $0x128] sm:$0xff] }
  0x21   : > { %1679 = vmatpush3.bf16.msra.mxu1 %v1902_v19  ;;  %1616 = vmatprep.subr.bf16.mxu0 %v1903_v20  ;;  %v1919_v5 = vld [vmem:[%s2664_s1 + $0x150] sm:$0xff]   ;;  %v219_v8 = vld [vmem:[%s2225_s7 + $0x158] sm:$0xff]  ;;  %v221_v10 = vld [vmem:[%s2225_s7 + $0x168] sm:$0xff]  ;;  %v302_v12 = vpack.c.bf16 %v211_v3, %v204_v2  ;;  %v304_v13 = vpack.c.bf16 %v213_v7, %v206_v4 }
  0x22   : > { %1680 = vmatprep.subr.bf16.mxu1 %v1904_v21  ;;  %v1920_v6 = vld [vmem:[%s2664_s1 + $0x110] sm:$0xff]   ;;  %v228_v11 = vld [vmem:[%s2225_s7 + $0x1a0] sm:$0xff]  ;;  %v1921_v15 = vld [vmem:[%s2664_s1 + $0x158] sm:$0xff]  }
  0x23   : > { %v226_v9 = vld [vmem:[%s2225_s7 + $0x190] sm:$0xff]  ;;  %v312_v16 = vpack.c.bf16 %v228_v11, %v221_v10  ;;  %v1922_v17 = vld [vmem:[%s2664_s1 + $0x118] sm:$0xff]   ;;  %v225_v19 = vld [vmem:[%s2225_s7 + $0x188] sm:$0xff] }
  0x24   : > { %1617 = vmatpush3.bf16.msra.mxu0 %v1905_v22  ;;  %v310_v14 = vpack.c.bf16 %v226_v9, %v219_v8  ;;  %v218_v18 = vld [vmem:[%s2225_s7 + $0x150] sm:$0xff]  ;;  %v220_v20 = vld [vmem:[%s2225_s7 + $0x160] sm:$0xff]  ;;  %v227_v21 = vld [vmem:[%s2225_s7 + $0x198] sm:$0xff] }
  0x25   : > { %1681 = vmatpush3.bf16.msra.mxu1 %v1906_v23  ;;  %1618 = vmatprep.subr.bf16.mxu0 %v1907_v24  ;;  %v233_v22 = vld [vmem:[%s2225_s7 + $0x1c8] sm:$0xff]  ;;  %v240_v23 = vld [vmem:[%s2225_s7 + $0x200] sm:$0xff]  ;;  %v239_v35 = vld [vmem:[%s2225_s7 + $0x1f8] sm:$0xff] }
  0x26   : > { %1682 = vmatprep.subr.bf16.mxu1 %v1908_v25  ;;  %v1923_v24 = vld [vmem:[%s2664_s1 + $0x160] sm:$0xff]   ;;  %v235_v25 = vld [vmem:[%s2225_s7 + $0x1d8] sm:$0xff]  ;;  %v1925_v32 = vld [vmem:[%s2664_s1 + $0x168] sm:$0xff]  }
  0x27   : > { %v1926_v33 = vld [vmem:[%s2664_s1 + $0x128] sm:$0xff]   ;;  %v232_v34 = vld [vmem:[%s2225_s7 + $0x1c0] sm:$0xff]  ;;  %v234_v36 = vld [vmem:[%s2225_s7 + $0x1d0] sm:$0xff] }
  0x28   : > { %1619 = vmatpush3.bf16.msra.mxu0 %v1909_v26  ;;  %v242_v26 = vld [vmem:[%s2225_s7 + $0x210] sm:$0xff]  ;;  %v241_v37 = vld [vmem:[%s2225_s7 + $0x208] sm:$0xff]  ;;  %v247_v38 = vld [vmem:[%s2225_s7 + $0x238] sm:$0xff] }
  0x29   : > { %1683 = vmatpush3.bf16.msra.mxu1 %v1910_v27  ;;  %1620 = vmatprep.subr.bf16.mxu0 %v1911_v28  ;;  %v1924_v27 = vld [vmem:[%s2664_s1 + $0x120] sm:$0xff]   ;;  %v309_v28 = vpack.c.bf16 %v225_v19, %v218_v18  ;;  %v254_v39 = vld [vmem:[%s2225_s7 + $0x270] sm:$0xff]  ;;  %v1929_v49 = vld [vmem:[%s2664_s1 + $0x178] sm:$0xff]  }
  0x2a   : > { %1684 = vmatprep.subr.bf16.mxu1 %v1912_v29  ;;  %v311_v29 = vpack.c.bf16 %v227_v21, %v220_v20  ;;  %v256_v41 = vld [vmem:[%s2225_s7 + $0x280] sm:$0xff]  ;;  %v1927_v42 = vld [vmem:[%s2664_s1 + $0x170] sm:$0xff]   ;;  %v324_v46 = vpack.c.bf16 %v254_v39, %v247_v38  ;;  %v1930_v52 = vld [vmem:[%s2664_s1 + $0x138] sm:$0xff]  }
  0x2b   : > { %v246_v48 = vld [vmem:[%s2225_s7 + $0x230] sm:$0xff]  ;;  %v255_v53 = vld [vmem:[%s2225_s7 + $0x278] sm:$0xff]  ;;  %v261_v54 = vld [vmem:[%s2225_s7 + $0x2a8] sm:$0xff] }
  0x2c   : > { %1621 = vmatpush3.bf16.msra.mxu0 %v1913_v30  ;;  %v317_v30 = vpack.c.bf16 %v240_v23, %v233_v22  ;;  %v268_v55 = vld [vmem:[%s2225_s7 + $0x2e0] sm:$0xff]  ;;  %v267_v0 = vld [vmem:[%s2225_s7 + $0x2d8] sm:$0xff]  ;;  %v269_v2 = vld [vmem:[%s2225_s7 + $0x2e8] sm:$0xff] }
  0x2d   : > { %1685 = vmatpush3.bf16.msra.mxu1 %v1914_v31  ;;  %1734 = vmatprep.subr.bf16.mxu0 %v1915_v44  ;;  %v319_v31 = vpack.c.bf16 %v242_v26, %v235_v25  ;;  %v331_v61 = vpack.c.bf16 %v268_v55, %v261_v54  ;;  %v260_v63 = vld [vmem:[%s2225_s7 + $0x2a0] sm:$0xff]  ;;  %v275_v3 = vld [vmem:[%s2225_s7 + $0x318] sm:$0xff]  ;;  %v282_v4 = vld [vmem:[%s2225_s7 + $0x350] sm:$0xff] }
  0x2e   : > { %1825 = vmatprep.subr.bf16.mxu1 %v1915_v44  ;;  %v1928_v44 = vld [vmem:[%s2664_s1 + $0x130] sm:$0xff]   ;;  %v330_v7 = vpack.c.bf16 %v267_v0, %v260_v63  ;;  %v338_v9 = vpack.c.bf16 %v282_v4, %v275_v3  ;;  %v272_v18 = vld [vmem:[%s2225_s7 + $0x300] sm:$0xff]  ;;  %v271_v26 = vld [vmem:[%s2225_s7 + $0x2f8] sm:$0xff] }
  0x2f   : > { %801 = vmatmul.mubr.bf16.vlgmr.msra.gmra.mrb[0].mxu0 %v288_v40  ;;  %v249_v40 = vld [vmem:[%s2225_s7 + $0x248] sm:$0xff]  ;;  %v274_v11 = vld [vmem:[%s2225_s7 + $0x310] sm:$0xff]  ;;  %v180_v23 = vld [vmem:[%s2225_s7 + $0x20] sm:$0xff] }
  0x30   : > { %898 = vmatmul.mubr.bf16.vlgmr.msra.gmra.mrb[0].mxu1 %v290_v43  ;;  %1735 = vmatpush3.bf16.msra.mxu0 %v1916_v45  ;;  %v316_v43 = vpack.c.bf16 %v239_v35, %v232_v34  ;;  %v326_v47 = vpack.c.bf16 %v256_v41, %v249_v40  ;;  %v264_v25 = vld [vmem:[%s2225_s7 + $0x2c0] sm:$0xff]  ;;  %v194_v35 = vld [vmem:[%s2225_s7 + $0x90] sm:$0xff]  ;;  %v285_v38 = vld [vmem:[%s2225_s7 + $0x368] sm:$0xff] }
  0x31   : > { %1833 = vmatpush3.bf16.msra.mxu1 %v1916_v45  ;;  %808 = vmatprep.mubr.bf16.mxu0 %v296_v50  ;;  %v318_v45 = vpack.c.bf16 %v241_v37, %v234_v36  ;;  %v253_v50 = vld [vmem:[%s2225_s7 + $0x268] sm:$0xff]  ;;  %v278_v37 = vld [vmem:[%s2225_s7 + $0x330] sm:$0xff]  ;;  %v216_v40 = vld [vmem:[%s2225_s7 + $0x140] sm:$0xff] }
  0x32   : > { %905 = vmatprep.mubr.bf16.mxu1 %v298_v51  ;;  %1736 = vmatprep.subr.bf16.mxu0 %v1917_v57  ;;  %v248_v51 = vld [vmem:[%s2225_s7 + $0x240] sm:$0xff]  ;;  %v201_v36 = vld [vmem:[%s2225_s7 + $0xc8] sm:$0xff]  ;;  %v182_v41 = vld [vmem:[%s2225_s7 + $0x30] sm:$0xff] }
  0x33   : > { %1826 = vmatprep.subr.bf16.mxu1 %v1917_v57  ;;  %v270_v57 = vld [vmem:[%s2225_s7 + $0x2f0] sm:$0xff]  ;;  %v325_v60 = vpack.c.bf16 %v255_v53, %v248_v51  ;;  %v209_v39 = vld [vmem:[%s2225_s7 + $0x108] sm:$0xff]  ;;  %v223_v51 = vld [vmem:[%s2225_s7 + $0x178] sm:$0xff] }
  0x34   : > { %1737 = vmatpush3.bf16.msra.mxu0 %v1918_v59  ;;  %v210_v53 = vld [vmem:[%s2225_s7 + $0x110] sm:$0xff]  ;;  %v217_v54 = vld [vmem:[%s2225_s7 + $0x148] sm:$0xff]  ;;  %v244_v0 = vld [vmem:[%s2225_s7 + $0x220] sm:$0xff] }
  0x35   : > { %1834 = vmatpush3.bf16.msra.mxu1 %v1918_v59  ;;  %1738 = vmatprep.subr.bf16.mxu0 %v1919_v5  ;;  %v1931_v59 = vld [vmem:[%s2664_s1 + $0x180] sm:$0xff]   ;;  %v237_v63 = vld [vmem:[%s2225_s7 + $0x1e8] sm:$0xff] }
  0x36   : > { %1827 = vmatprep.subr.bf16.mxu1 %v1919_v5  ;;  %v277_v5 = vld [vmem:[%s2225_s7 + $0x328] sm:$0xff] }
  0x37   : > { %809 = vmatmul.mubr.bf16.gmra.mrb[4].mxu0 %v295_v56  ;;  %v263_v56 = vld [vmem:[%s2225_s7 + $0x2b8] sm:$0xff] }
  0x38   : > { %906 = vmatmul.mubr.bf16.gmra.mrb[4].mxu1 %v297_v58  ;;  %816 = vmatprep.mubr.bf16.mxu0 %v303_v62  ;;  %v323_v58 = vpack.c.bf16 %v253_v50, %v246_v48  ;;  %v333_v62 = vpack.c.bf16 %v270_v57, %v263_v56  ;;  %v215_v48 = vld [vmem:[%s2225_s7 + $0x138] sm:$0xff] }
  0x39   : > { %913 = vmatprep.mubr.bf16.mxu1 %v305_v1  ;;  %1739 = vmatpush3.bf16.msra.mxu0 %v1920_v6  ;;  %v262_v1 = vld [vmem:[%s2225_s7 + $0x2b0] sm:$0xff]  ;;  %v203_v50 = vld [vmem:[%s2225_s7 + $0xd8] sm:$0xff] }
  0x3a   : > { %1835 = vmatpush3.bf16.msra.mxu1 %v1920_v6  ;;  %1740 = vmatprep.subr.bf16.mxu0 %v1921_v15  ;;  %v284_v6 = vld [vmem:[%s2225_s7 + $0x360] sm:$0xff]  ;;  %v332_v8 = vpack.c.bf16 %v269_v2, %v262_v1  ;;  %v238_v1 = vld [vmem:[%s2225_s7 + $0x1f0] sm:$0xff]  ;;  %v245_v2 = vld [vmem:[%s2225_s7 + $0x228] sm:$0xff] }
  0x3b   : > { %1828 = vmatprep.subr.bf16.mxu1 %v1921_v15  ;;  %v340_v10 = vpack.c.bf16 %v284_v6, %v277_v5  ;;  %v181_v15 = vld [vmem:[%s2225_s7 + $0x28] sm:$0xff]  ;;  %v321_v5 = vpack.c.bf16 %v244_v0, %v237_v63  ;;  %v322_v6 = vpack.c.bf16 %v245_v2, %v238_v1 }
  0x3d   : > { %1741 = vmatpush3.bf16.msra.mxu0 %v1922_v17 }
  0x3e   : > { %1836 = vmatpush3.bf16.msra.mxu1 %v1922_v17  ;;  %1742 = vmatprep.subr.bf16.mxu0 %v1923_v24  ;;  %v265_v17 = vld [vmem:[%s2225_s7 + $0x2c8] sm:$0xff] }
  0x3f   : > { %817 = vmatmul.mubr.bf16.gmra.mrb[8].mxu0 %v302_v12  ;;  %1829 = vmatprep.subr.bf16.mxu1 %v1923_v24  ;;  %v281_v12 = vld [vmem:[%s2225_s7 + $0x348] sm:$0xff]  ;;  %v335_v22 = vpack.c.bf16 %v272_v18, %v265_v17  ;;  %v187_v24 = vld [vmem:[%s2225_s7 + $0x58] sm:$0xff] }
  0x40   : > { %914 = vmatmul.mubr.bf16.gmra.mrb[8].mxu1 %v304_v13  ;;  %824 = vmatprep.mubr.bf16.mxu0 %v310_v14  ;;  %v276_v13 = vld [vmem:[%s2225_s7 + $0x320] sm:$0xff]  ;;  %v283_v14 = vld [vmem:[%s2225_s7 + $0x358] sm:$0xff]  ;;  %v337_v19 = vpack.c.bf16 %v281_v12, %v274_v11  ;;  %v258_v12 = vld [vmem:[%s2225_s7 + $0x290] sm:$0xff] }
  0x41   : > { %921 = vmatprep.mubr.bf16.mxu1 %v312_v16  ;;  %1743 = vmatpush3.bf16.msra.mxu0 %v1924_v27  ;;  %v188_v16 = vld [vmem:[%s2225_s7 + $0x60] sm:$0xff]  ;;  %v339_v20 = vpack.c.bf16 %v283_v14, %v276_v13  ;;  %v251_v11 = vld [vmem:[%s2225_s7 + $0x258] sm:$0xff]  ;;  %v266_v13 = vld [vmem:[%s2225_s7 + $0x2d0] sm:$0xff] }
  0x42   : > { %1837 = vmatpush3.bf16.msra.mxu1 %v1924_v27  ;;  %1744 = vmatprep.subr.bf16.mxu0 %v1925_v32  ;;  %v293_v21 = vpack.c.bf16 %v188_v16, %v181_v15  ;;  %v195_v27 = vld [vmem:[%s2225_s7 + $0x98] sm:$0xff]  ;;  %v273_v14 = vld [vmem:[%s2225_s7 + $0x308] sm:$0xff]  ;;  %v328_v17 = vpack.c.bf16 %v258_v12, %v251_v11 }
  0x43   : > { %1830 = vmatprep.subr.bf16.mxu1 %v1925_v32  ;;  %v334_v32 = vpack.c.bf16 %v271_v26, %v264_v25  ;;  %v336_v18 = vpack.c.bf16 %v273_v14, %v266_v13 }
  0x45   : > { %1745 = vmatpush3.bf16.msra.mxu0 %v1926_v33 }
  0x46   : > { %1838 = vmatpush3.bf16.msra.mxu1 %v1926_v33  ;;  %1746 = vmatprep.subr.bf16.mxu0 %v1927_v42 }
  0x47   : > { %825 = vmatmul.mubr.bf16.gmra.mrb[12].mxu0 %v309_v28  ;;  %1831 = vmatprep.subr.bf16.mxu1 %v1927_v42  ;;  %v202_v28 = vld [vmem:[%s2225_s7 + $0xd0] sm:$0xff]  ;;  %v189_v42 = vld [vmem:[%s2225_s7 + $0x68] sm:$0xff] }
  0x48   : > { %922 = vmatmul.mubr.bf16.gmra.mrb[12].mxu1 %v311_v29  ;;  %832 = vmatprep.mubr.bf16.mxu0 %v317_v30  ;;  %v279_v29 = vld [vmem:[%s2225_s7 + $0x338] sm:$0xff]  ;;  %v286_v30 = vld [vmem:[%s2225_s7 + $0x370] sm:$0xff]  ;;  %v300_v33 = vpack.c.bf16 %v202_v28, %v195_v27  ;;  %v2407_v27 = vld [vmem:[%s2665_s2] ss:$0 sm:$0xff] }
  0x49   : > { %929 = vmatprep.mubr.bf16.mxu1 %v319_v31  ;;  %1747 = vmatpush3.bf16.msra.mxu0 %v1928_v44  ;;  %v292_v31 = vpack.c.bf16 %v187_v24, %v180_v23  ;;  %v342_v34 = vpack.c.bf16 %v286_v30, %v279_v29 }
  0x4a   : > { %1839 = vmatpush3.bf16.msra.mxu1 %v1928_v44  ;;  %1748 = vmatprep.subr.bf16.mxu0 %v1929_v49  ;;  %v341_v44 = vpack.c.bf16 %v285_v38, %v278_v37 }
  0x4b   : > { %1832 = vmatprep.subr.bf16.mxu1 %v1929_v49  ;;  %v196_v49 = vld [vmem:[%s2225_s7 + $0xa0] sm:$0xff] }
  0x4c   : > { %v301_v56 = vpack.c.bf16 %v203_v50, %v196_v49 }
  0x4d   : > { %1749 = vmatpush3.bf16.msra.mxu0 %v1930_v52 }
  0x4e   : > { %1840 = vmatpush3.bf16.msra.mxu1 %v1930_v52  ;;  %v230_v52 = vld [vmem:[%s2225_s7 + $0x1b0] sm:$0xff] }
  0x4f   : > { %833 = vmatmul.mubr.bf16.gmra.mrb[16].mxu0 %v316_v43  ;;  %1807 = vmatprep.subr.bf16.mxu1 %v1931_v59  ;;  %v299_v43 = vpack.c.bf16 %v201_v36, %v194_v35  ;;  %v314_v57 = vpack.c.bf16 %v230_v52, %v223_v51 }
  0x50   : > { %930 = vmatmul.mubr.bf16.gmra.mrb[16].mxu1 %v318_v45  ;;  %840 = vmatprep.mubr.bf16.mxu0 %v324_v46  ;;  %v307_v45 = vpack.c.bf16 %v216_v40, %v209_v39  ;;  %v294_v46 = vpack.c.bf16 %v189_v42, %v182_v41 }
  0x51   : > { %937 = vmatprep.mubr.bf16.mxu1 %v326_v47  ;;  %v208_v47 = vld [vmem:[%s2225_s7 + $0x100] sm:$0xff] }
  0x52   : > { %v306_v55 = vpack.c.bf16 %v215_v48, %v208_v47 }
  0x57   : > { %841 = vmatmul.mubr.bf16.gmra.mrb[20].mxu0 %v323_v58  ;;  %v308_v58 = vpack.c.bf16 %v217_v54, %v210_v53 }
  0x58   : > { %938 = vmatmul.mubr.bf16.gmra.mrb[20].mxu1 %v325_v60  ;;  %848 = vmatprep.mubr.bf16.mxu0 %v331_v61  ;;  %v229_v60 = vld [vmem:[%s2225_s7 + $0x1a8] sm:$0xff]  ;;  %v224_v61 = vld [vmem:[%s2225_s7 + $0x180] sm:$0xff] }
  0x59   : > { %945 = vmatprep.mubr.bf16.mxu1 %v333_v62  ;;  %v231_v62 = vld [vmem:[%s2225_s7 + $0x1b8] sm:$0xff] }
  0x5a   : > { %v315_v4 = vpack.c.bf16 %v231_v62, %v224_v61 }
  0x5f   : > { %849 = vmatmul.mubr.bf16.gmra.mrb[24].mxu0 %v330_v7  ;;  %v236_v7 = vld [vmem:[%s2225_s7 + $0x1e0] sm:$0xff] }
  0x60   : > { %946 = vmatmul.mubr.bf16.gmra.mrb[24].mxu1 %v332_v8  ;;  %856 = vmatprep.mubr.bf16.mxu0 %v338_v9  ;;  %v243_v8 = vld [vmem:[%s2225_s7 + $0x218] sm:$0xff]  ;;  %v252_v9 = vld [vmem:[%s2225_s7 + $0x260] sm:$0xff] }
  0x61   : > { %953 = vmatprep.mubr.bf16.mxu1 %v340_v10  ;;  %v259_v10 = vld [vmem:[%s2225_s7 + $0x298] sm:$0xff]  ;;  %v320_v15 = vpack.c.bf16 %v243_v8, %v236_v7 }
  0x62   : > { %v329_v16 = vpack.c.bf16 %v259_v10, %v252_v9 }
  0x67   : > { %857 = vmatmul.mubr.bf16.gmra.mrb[28].mxu0 %v337_v19  ;;  %v250_v19 = vld [vmem:[%s2225_s7 + $0x250] sm:$0xff] }
  0x68   : > { %954 = vmatmul.mubr.bf16.gmra.mrb[28].mxu1 %v339_v20  ;;  %994 = vmatprep.mubr.bf16.mxu0 %v293_v21  ;;  %v257_v20 = vld [vmem:[%s2225_s7 + $0x288] sm:$0xff]  ;;  %v280_v21 = vld [vmem:[%s2225_s7 + $0x340] sm:$0xff] }
  0x69   : > { %1042 = vmatprep.mubr.bf16.mxu1 %v335_v22  ;;  %v287_v22 = vld [vmem:[%s2225_s7 + $0x378] sm:$0xff]  ;;  %v327_v23 = vpack.c.bf16 %v257_v20, %v250_v19 }
  0x6a   : > { %v343_v24 = vpack.c.bf16 %v287_v22, %v280_v21 }
  0x6f   : > { %995 = vmatmul.mubr.bf16.vlgmr.msra.gmra.mrb[32].mxu0 %v292_v31 }
  0x70   : > { %1043 = vmatmul.mubr.bf16.vlgmr.msra.gmra.mrb[32].mxu1 %v334_v32  ;;  %1002 = vmatprep.mubr.bf16.mxu0 %v300_v33 }
  0x71   : > { %1808 = vmatpush3.bf16.msra.mxu1 %v1931_v59  ;;  %1050 = vmatprep.mubr.bf16.mxu1 %v342_v34  ;;  %v222_v59 = vld [vmem:[%s2225_s7 + $0x170] sm:$0xff]  ;;  %s164_s7 = sand.u32 1, %s2050_s13  }
  0x72   : > { %v313_v3 = vpack.c.bf16 %v229_v60, %v222_v59  ;;  %s1460_s24 = sshll.u32 %s164_s7, 6  ;;  %s2622_s16 = scalar_lea.sflag [#allocation3], %s164_s7 }
  0x73   : > { %s2587_s25 = scalar_lea.vmem [#allocation2], %s1460_s24 }
  0x74   : > { %s1394_s27 = sshll.u32 %s2587_s25, 4  ;;  %s2617_s27 = int_to_ptr.vmem [resolvable:$true] %s1394_s27 }
  0x75   : > { %s1996_s4 = scalar_lea.vmem %s2617_s27, 1024  ;;  %p2003_p0 = scmp.lt.s32.totalorder %s2617_s27, %s2001_s9 }
  0x76   : > { %p1997_p11 = scmp.ne.s32.totalorder %s2617_s27, %s1996_s4  ;;  %p2004_p1 = scmp.lt.s32.totalorder %s2002_s6, %s1996_s4 }
  0x77   : > { %1003 = vmatmul.mubr.bf16.gmra.mrb[36].mxu0 %v299_v43 }
  0x78   : > { %1051 = vmatmul.mubr.bf16.gmra.mrb[36].mxu1 %v341_v44  ;;  %1010 = vmatprep.mubr.bf16.mxu0 %v307_v45  ;;  %p1998_p12 = pnand %p1997_p11, %p2121_p5  ;;  %p2005_p2 = por %p2004_p1, %p2003_p0 }
  0x79   : > { %1809 = vmatprep.mubr.msk.bf16.mxu1 %vm743_vm0, %v294_v46 }
  0x7a   : > { %p1999_p13 = pneg %p1998_p12 }
  0x7c   : > { %p2006_p3 = pnand %p2005_p2, %p1999_p13 }
  0x7f   : > { %1011 = vmatmul.mubr.bf16.gmra.mrb[40].mxu0 %v306_v55 }
  0x80   : > { %1810 = vmatmul.mubr.msk.bf16.vlgmr.msra.gmra.mrb[40].mxu1 %vm743_vm0, %v301_v56  ;;  %1018 = vmatprep.mubr.bf16.mxu0 %v314_v57 }
  0x81   : > { %1813 = vmatprep.mubr.msk.bf16.mxu1 %vm743_vm0, %v308_v58 }
  0x87   : > { %1019 = vmatmul.mubr.bf16.gmra.mrb[44].mxu0 %v313_v3 }
  0x88   : > { %1814 = vmatmul.mubr.msk.bf16.gmra.mrb[44].mxu1 %vm743_vm0, %v315_v4  ;;  %1026 = vmatprep.mubr.bf16.mxu0 %v321_v5 }
  0x89   : > { %1817 = vmatprep.mubr.msk.bf16.mxu1 %vm743_vm0, %v322_v6 }
  0x8f   : > { %1027 = vmatmul.mubr.bf16.gmra.mrb[48].mxu0 %v320_v15 }
  0x90   : > { %1818 = vmatmul.mubr.msk.bf16.gmra.mrb[48].mxu1 %vm743_vm0, %v329_v16  ;;  %1034 = vmatprep.mubr.bf16.mxu0 %v328_v17 }
  0x91   : > { %1821 = vmatprep.mubr.msk.bf16.mxu1 %vm743_vm0, %v336_v18 }
  0x97   : > { %1035 = vmatmul.mubr.bf16.gmra.mrb[52].mxu0 %v327_v23 }
  0x98   : > { %1822 = vmatmul.mubr.msk.bf16.gmra.mrb[52].mxu1 %vm743_vm0, %v343_v24 }
 0x102   : > { %v1622_v25 = vpop.f32.mrb[0].mxu0 }
 0x103   : > { %v1686_v26 = vpop.f32.mrb[0].mxu1  ;;  %v1623_v28 = vpop.f32.mrb[1].mxu0 }
 0x104   : > { %v1624_v29 = vadd.f32 %v1623_v28, %v1622_v25  ;;  %v1687_v30 = vpop.f32.mrb[1].mxu1  ;;  %v1625_v31 = vpop.f32.mrb[2].mxu0 }
 0x105   : > { %v1688_v32 = vadd.f32 %v1687_v30, %v1686_v26  ;;  %v1689_v33 = vpop.f32.mrb[2].mxu1  ;;  %v1626_v34 = vpop.f32.mrb[3].mxu0 }
 0x106   : > { %v803_v35 = vadd.f32 %v1624_v29, %v2407_v27  ;;  %v1627_v36 = vadd.f32 %v1626_v34, %v1625_v31  ;;  %v1690_v37 = vpop.f32.mrb[3].mxu1 }
 0x107   : > { %v1691_v38 = vadd.f32 %v1690_v37, %v1689_v33 }
 0x108   : > { %v2410_v39 = vadd.f32 %v1688_v32, %v803_v35  ;;  %v806_v40 = vadd.f32 %v1627_v36, %v2407_v27 }
 0x10a   : > { %v2413_v41 = vadd.f32 %v1691_v38, %v806_v40  ;;  %v1628_v42 = vpop.f32.mrb[4].mxu0 }
 0x10b   : > { %v1692_v43 = vpop.f32.mrb[4].mxu1  ;;  %v1629_v44 = vpop.f32.mrb[5].mxu0 }
 0x10c   : > { %v1630_v45 = vadd.f32 %v1629_v44, %v1628_v42  ;;  %v1693_v46 = vpop.f32.mrb[5].mxu1  ;;  %v1631_v47 = vpop.f32.mrb[6].mxu0 }
 0x10d   : > { %v1694_v48 = vadd.f32 %v1693_v46, %v1692_v43  ;;  %v1695_v49 = vpop.f32.mrb[6].mxu1  ;;  %v1632_v50 = vpop.f32.mrb[7].mxu0 }
 0x10e   : > { %v811_v51 = vadd.f32 %v1630_v45, %v2407_v27  ;;  %v1633_v52 = vadd.f32 %v1632_v50, %v1631_v47  ;;  %v1696_v53 = vpop.f32.mrb[7].mxu1 }
 0x10f   : > { %v1697_v54 = vadd.f32 %v1696_v53, %v1695_v49 }
 0x110   : > { %v2416_v55 = vadd.f32 %v1694_v48, %v811_v51  ;;  %v814_v56 = vadd.f32 %v1633_v52, %v2407_v27 }
 0x112   : > { %v2419_v57 = vadd.f32 %v1697_v54, %v814_v56  ;;  %v1634_v58 = vpop.f32.mrb[8].mxu0 }
 0x113   : > { %v1698_v59 = vpop.f32.mrb[8].mxu1  ;;  %v1635_v60 = vpop.f32.mrb[9].mxu0 }
 0x114   : > { %v1636_v61 = vadd.f32 %v1635_v60, %v1634_v58  ;;  %v1699_v62 = vpop.f32.mrb[9].mxu1  ;;  %v1637_v63 = vpop.f32.mrb[10].mxu0 }
 0x115   : > { %v1700_v0 = vadd.f32 %v1699_v62, %v1698_v59  ;;  %v1701_v1 = vpop.f32.mrb[10].mxu1  ;;  %v1638_v2 = vpop.f32.mrb[11].mxu0 }
 0x116   : > { %v819_v3 = vadd.f32 %v1636_v61, %v2407_v27  ;;  %v1639_v4 = vadd.f32 %v1638_v2, %v1637_v63  ;;  %v1702_v5 = vpop.f32.mrb[11].mxu1 }
 0x117   : > { %v1703_v6 = vadd.f32 %v1702_v5, %v1701_v1 }
 0x118   : > { %v2422_v7 = vadd.f32 %v1700_v0, %v819_v3  ;;  %v822_v8 = vadd.f32 %v1639_v4, %v2407_v27 }
 0x11a   : > { %v2425_v9 = vadd.f32 %v1703_v6, %v822_v8  ;;  %v1640_v10 = vpop.f32.mrb[12].mxu0 }
 0x11b   : > { %v1704_v11 = vpop.f32.mrb[12].mxu1  ;;  %v1641_v12 = vpop.f32.mrb[13].mxu0 }
 0x11c   : > { %v1642_v13 = vadd.f32 %v1641_v12, %v1640_v10  ;;  %v1705_v14 = vpop.f32.mrb[13].mxu1  ;;  %v1643_v15 = vpop.f32.mrb[14].mxu0 }
 0x11d   : > { %v1706_v16 = vadd.f32 %v1705_v14, %v1704_v11  ;;  %v1707_v17 = vpop.f32.mrb[14].mxu1  ;;  %v1644_v18 = vpop.f32.mrb[15].mxu0 }
 0x11e   : > { %v827_v19 = vadd.f32 %v1642_v13, %v2407_v27  ;;  %v1645_v20 = vadd.f32 %v1644_v18, %v1643_v15  ;;  %v1708_v21 = vpop.f32.mrb[15].mxu1 }
 0x11f   : > { %v1709_v22 = vadd.f32 %v1708_v21, %v1707_v17 }
 0x120   : > { %v2428_v23 = vadd.f32 %v1706_v16, %v827_v19  ;;  %v830_v24 = vadd.f32 %v1645_v20, %v2407_v27 }
 0x122   : > { %v2431_v25 = vadd.f32 %v1709_v22, %v830_v24  ;;  %v1646_v26 = vpop.f32.mrb[16].mxu0 }
 0x123   : > { %v1710_v28 = vpop.f32.mrb[16].mxu1  ;;  %v1647_v29 = vpop.f32.mrb[17].mxu0 }
 0x124   : > { %v1648_v30 = vadd.f32 %v1647_v29, %v1646_v26  ;;  %v1711_v31 = vpop.f32.mrb[17].mxu1  ;;  %v1649_v32 = vpop.f32.mrb[18].mxu0 }
 0x125   : > { %v1712_v33 = vadd.f32 %v1711_v31, %v1710_v28  ;;  %v1713_v34 = vpop.f32.mrb[18].mxu1  ;;  %v1650_v35 = vpop.f32.mrb[19].mxu0 }
 0x126   : > { %v835_v36 = vadd.f32 %v1648_v30, %v2407_v27  ;;  %v1651_v37 = vadd.f32 %v1650_v35, %v1649_v32  ;;  %v1714_v38 = vpop.f32.mrb[19].mxu1 }
 0x127   : > { %v1715_v40 = vadd.f32 %v1714_v38, %v1713_v34 }
 0x128   : > { %v2434_v42 = vadd.f32 %v1712_v33, %v835_v36  ;;  %v838_v43 = vadd.f32 %v1651_v37, %v2407_v27 }
 0x12a   : > { %v2437_v44 = vadd.f32 %v1715_v40, %v838_v43  ;;  %v1652_v45 = vpop.f32.mrb[20].mxu0 }
 0x12b   : > { %v1716_v46 = vpop.f32.mrb[20].mxu1  ;;  %v1653_v47 = vpop.f32.mrb[21].mxu0 }
 0x12c   : > { %v1654_v48 = vadd.f32 %v1653_v47, %v1652_v45  ;;  %v1717_v49 = vpop.f32.mrb[21].mxu1  ;;  %v1655_v50 = vpop.f32.mrb[22].mxu0 }
 0x12d   : > { %v1718_v51 = vadd.f32 %v1717_v49, %v1716_v46  ;;  %v1719_v52 = vpop.f32.mrb[22].mxu1  ;;  %v1656_v53 = vpop.f32.mrb[23].mxu0 }
 0x12e   : > { %v843_v54 = vadd.f32 %v1654_v48, %v2407_v27  ;;  %v1657_v56 = vadd.f32 %v1656_v53, %v1655_v50  ;;  %v1720_v58 = vpop.f32.mrb[23].mxu1 }
 0x12f   : > { %v1721_v59 = vadd.f32 %v1720_v58, %v1719_v52 }
 0x130   : > { %v2440_v60 = vadd.f32 %v1718_v51, %v843_v54  ;;  %v846_v61 = vadd.f32 %v1657_v56, %v2407_v27 }
 0x132   : > { %v2443_v62 = vadd.f32 %v1721_v59, %v846_v61  ;;  %v1658_v63 = vpop.f32.mrb[24].mxu0 }
 0x133   : > { %v1722_v0 = vpop.f32.mrb[24].mxu1  ;;  %v1659_v1 = vpop.f32.mrb[25].mxu0 }
 0x134   : > { %v1660_v2 = vadd.f32 %v1659_v1, %v1658_v63  ;;  %v1723_v3 = vpop.f32.mrb[25].mxu1  ;;  %v1661_v4 = vpop.f32.mrb[26].mxu0 }
 0x135   : > { %v1724_v5 = vadd.f32 %v1723_v3, %v1722_v0  ;;  %v1725_v6 = vpop.f32.mrb[26].mxu1  ;;  %v1662_v8 = vpop.f32.mrb[27].mxu0 }
 0x136   : > { %v851_v10 = vadd.f32 %v1660_v2, %v2407_v27  ;;  %v1663_v11 = vadd.f32 %v1662_v8, %v1661_v4  ;;  %v1726_v12 = vpop.f32.mrb[27].mxu1 }
 0x137   : > { %v1727_v13 = vadd.f32 %v1726_v12, %v1725_v6 }
 0x138   : > { %v948_v14 = vadd.f32 %v1724_v5, %v851_v10  ;;  %v854_v15 = vadd.f32 %v1663_v11, %v2407_v27 }
 0x13a   : > { %v951_v16 = vadd.f32 %v1727_v13, %v854_v15  ;;  %v1664_v17 = vpop.f32.mrb[28].mxu0 }
 0x13b   : > { %v1728_v18 = vpop.f32.mrb[28].mxu1  ;;  %v1665_v19 = vpop.f32.mrb[29].mxu0 }
 0x13c   : > { %v1666_v20 = vadd.f32 %v1665_v19, %v1664_v17  ;;  %v1729_v21 = vpop.f32.mrb[29].mxu1  ;;  %v1667_v22 = vpop.f32.mrb[30].mxu0 }
 0x13d   : > { %v1730_v24 = vadd.f32 %v1729_v21, %v1728_v18  ;;  %v1731_v26 = vpop.f32.mrb[30].mxu1  ;;  %v1668_v28 = vpop.f32.mrb[31].mxu0 }
 0x13e   : > { %v859_v29 = vadd.f32 %v1666_v20, %v2407_v27  ;;  %v1669_v30 = vadd.f32 %v1668_v28, %v1667_v22  ;;  %v1732_v31 = vpop.f32.mrb[31].mxu1 }
 0x13f   : > { %v1733_v32 = vadd.f32 %v1732_v31, %v1731_v26 }
 0x140   : > { %v956_v33 = vadd.f32 %v1730_v24, %v859_v29  ;;  %v862_v34 = vadd.f32 %v1669_v30, %v2407_v27 }
 0x142   : > { %v959_v35 = vadd.f32 %v1733_v32, %v862_v34  ;;  %v1750_v36 = vpop.f32.mrb[32].mxu0 }
 0x143   : > { %v1786_v37 = vpop.f32.mrb[32].mxu1  ;;  %v1751_v38 = vpop.f32.mrb[33].mxu0 }
 0x144   : > { %v1752_v40 = vadd.f32 %v1751_v38, %v1750_v36  ;;  %v1787_v43 = vpop.f32.mrb[33].mxu1  ;;  %v1753_v45 = vpop.f32.mrb[34].mxu0 }
 0x145   : > { %v1788_v46 = vadd.f32 %v1787_v43, %v1786_v37  ;;  %v1789_v47 = vpop.f32.mrb[34].mxu1  ;;  %v1754_v48 = vpop.f32.mrb[35].mxu0 }
 0x146   : > { %v1755_v49 = vadd.f32 %v1754_v48, %v1753_v45  ;;  %v1790_v50 = vpop.f32.mrb[35].mxu1  ;;  %v997_v51 = vadd.f32 %v1752_v40, %v2410_v39 }
 0x147   : > { %v1791_v52 = vadd.f32 %v1790_v50, %v1789_v47  ;;  %v2450_v53 = vadd.f32 %v1788_v46, %v948_v14 }
 0x148   : > { %v1000_v54 = vadd.f32 %v1755_v49, %v2413_v41 }
 0x149   : > { %v2453_v27 = vadd.f32 %v1791_v52, %v951_v16 }
 0x14a   : > { %v1756_v56 = vpop.f32.mrb[36].mxu0 }
 0x14b   : > { %v1792_v58 = vpop.f32.mrb[36].mxu1  ;;  %v1757_v59 = vpop.f32.mrb[37].mxu0 }
 0x14c   : > { %v1758_v61 = vadd.f32 %v1757_v59, %v1756_v56  ;;  %v1793_v63 = vpop.f32.mrb[37].mxu1  ;;  %v1759_v0 = vpop.f32.mrb[38].mxu0 }
 0x14d   : > { %v1794_v1 = vadd.f32 %v1793_v63, %v1792_v58  ;;  %v1795_v2 = vpop.f32.mrb[38].mxu1  ;;  %v1760_v3 = vpop.f32.mrb[39].mxu0 }
 0x14e   : > { %v1761_v4 = vadd.f32 %v1760_v3, %v1759_v0  ;;  %v1796_v5 = vpop.f32.mrb[39].mxu1  ;;  %v1005_v39 = vadd.f32 %v1758_v61, %v2416_v55 }
 0x14f   : > { %v1797_v6 = vadd.f32 %v1796_v5, %v1795_v2  ;;  %v1053_v8 = vadd.f32 %v1794_v1, %v956_v33 }
 0x150   : > { %v1008_v10 = vadd.f32 %v1761_v4, %v2419_v57 }
 0x151   : > { %v2457_v41 = vadd.f32 %v1797_v6, %v959_v35 }
 0x152   : > { %v1762_v11 = vpop.f32.mrb[40].mxu0 }
 0x153   : > { %v1811_v12 = vpop.f32.mrb[40].mxu1  ;;  %v1763_v13 = vpop.f32.mrb[41].mxu0 }
 0x154   : > { %v2459_v14 = vadd.f32 %v1811_v12, %v1005_v39  ;;  %v1764_v15 = vadd.f32 %v1763_v13, %v1762_v11  ;;  %v1093_v16 = vpop.f32.mrb[41].mxu1  ;;  %v1765_v17 = vpop.f32.mrb[42].mxu0 }
 0x155   : > { %v2461_v18 = vadd.f32 %v1093_v16, %v997_v51  ;;  %v1812_v19 = vpop.f32.mrb[42].mxu1  ;;  %v1766_v20 = vpop.f32.mrb[43].mxu0 }
 0x156   : > { %v2463_v21 = vadd.f32 %v1812_v19, %v1008_v10  ;;  %v1767_v55 = vadd.f32 %v1766_v20, %v1765_v17  ;;  %v1096_v22 = vpop.f32.mrb[43].mxu1  ;;  %1160 = vmax.xlane.f32.xlu1 %v2459_v14  ;;  %v1013_v57 = vadd.f32 %v1764_v15, %v2422_v7 }
 0x157   : > { %v2467_v24 = vadd.f32 %v1096_v22, %v1000_v54  ;;  %1156 = vmax.xlane.f32.xlu0 %v2461_v18 }
 0x158   : > { %v1016_v26 = vadd.f32 %v1767_v55, %v2425_v9 }
 0x15a   : > { %1162 = vmax.xlane.f32.xlu1 %v2463_v21  ;;  %v1768_v28 = vpop.f32.mrb[44].mxu0 }
 0x15b   : > { %v1815_v29 = vpop.f32.mrb[44].mxu1  ;;  %1158 = vmax.xlane.f32.xlu0 %v2467_v24  ;;  %v1769_v30 = vpop.f32.mrb[45].mxu0 }
 0x15c   : > { %v1770_v31 = vadd.f32 %v1769_v30, %v1768_v28  ;;  %v1109_v32 = vpop.f32.mrb[45].mxu1  ;;  %v1771_v33 = vpop.f32.mrb[46].mxu0 }
 0x15d   : > { %v2473_v34 = vadd.f32 %v1109_v32, %v1013_v57  ;;  %v1816_v35 = vpop.f32.mrb[46].mxu1  ;;  %v1772_v7 = vpop.f32.mrb[47].mxu0 }
 0x15e   : > { %v1021_v36 = vadd.f32 %v1770_v31, %v2428_v23  ;;  %v1773_v37 = vadd.f32 %v1772_v7, %v1771_v33  ;;  %v1112_v38 = vpop.f32.mrb[47].mxu1 }
 0x15f   : > { %v2476_v40 = vadd.f32 %v1112_v38, %v1016_v26  ;;  %1164 = vmax.xlane.f32.xlu0 %v2473_v34 }
 0x160   : > { %v1024_v9 = vadd.f32 %v1773_v37, %v2431_v25  ;;  %v2480_v43 = vadd.f32 %v1815_v29, %v1021_v36 }
 0x161   : > { %1166 = vmax.xlane.f32.xlu1 %v2476_v40 }
 0x162   : > { %v1774_v45 = vpop.f32.mrb[48].mxu0  ;;  %v2483_v46 = vadd.f32 %v1816_v35, %v1024_v9 }
 0x163   : > { %v1819_v47 = vpop.f32.mrb[48].mxu1  ;;  %1168 = vmax.xlane.f32.xlu0 %v2480_v43  ;;  %v1775_v48 = vpop.f32.mrb[49].mxu0 }
 0x164   : > { %v1776_v23 = vadd.f32 %v1775_v48, %v1774_v45  ;;  %v1125_v49 = vpop.f32.mrb[49].mxu1  ;;  %v1777_v50 = vpop.f32.mrb[50].mxu0 }
 0x165   : > { %v1820_v51 = vpop.f32.mrb[50].mxu1  ;;  %1170 = vmax.xlane.f32.xlu1 %v2483_v46  ;;  %v1778_v52 = vpop.f32.mrb[51].mxu0 }
 0x166   : > { %v1029_v25 = vadd.f32 %v1776_v23, %v2434_v42  ;;  %v1779_v54 = vadd.f32 %v1778_v52, %v1777_v50  ;;  %v1128_v56 = vpop.f32.mrb[51].mxu1 }
 0x168   : > { %v2488_v58 = vadd.f32 %v1125_v49, %v1029_v25  ;;  %v1032_v59 = vadd.f32 %v1779_v54, %v2437_v44 }
 0x16a   : > { %v2491_v61 = vadd.f32 %v1128_v56, %v1032_v59  ;;  %v1780_v63 = vpop.f32.mrb[52].mxu0  ;;  %1172 = vmax.xlane.f32.xlu0 %v2488_v58 }
 0x16b   : > { %v1823_v0 = vpop.f32.mrb[52].mxu1  ;;  %v1781_v1 = vpop.f32.mrb[53].mxu0 }
 0x16c   : > { %v2494_v2 = vadd.f32 %v1823_v0, %v1053_v8  ;;  %v1782_v3 = vadd.f32 %v1781_v1, %v1780_v63  ;;  %v1141_v4 = vpop.f32.mrb[53].mxu1  ;;  %v1783_v5 = vpop.f32.mrb[54].mxu0  ;;  %1174 = vmax.xlane.f32.xlu1 %v2491_v61 }
 0x16d   : > { %v2498_v42 = vadd.f32 %v1141_v4, %v2450_v53  ;;  %v1824_v39 = vpop.f32.mrb[54].mxu1  ;;  %v1784_v6 = vpop.f32.mrb[55].mxu0 }
 0x16e   : > { %v1037_v44 = vadd.f32 %v1782_v3, %v2440_v60  ;;  %v2502_v10 = vadd.f32 %v1824_v39, %v2457_v41  ;;  %v1785_v11 = vadd.f32 %v1784_v6, %v1783_v5  ;;  %v1144_v12 = vpop.f32.mrb[55].mxu1 }
 0x16f   : > { %v2505_v8 = vadd.f32 %v1144_v12, %v2453_v27  ;;  %1180 = vmax.xlane.f32.xlu0 %v2498_v42 }
 0x170   : > { %v1040_v13 = vadd.f32 %v1785_v11, %v2443_v62  ;;  %v2509_v15 = vadd.f32 %v1819_v47, %v1037_v44 }
 0x171   : > { %1182 = vmax.xlane.f32.xlu1 %v2505_v8 }
 0x172   : > { %v2512_v53 = vadd.f32 %v1820_v51, %v1040_v13 }
 0x173   : > { %1176 = vmax.xlane.f32.xlu0 %v2509_v15 }
 0x175   : > { %1178 = vmax.xlane.f32.xlu1 %v2512_v53 }
 0x177   : > { %1184 = vmax.xlane.f32.xlu0 %v2494_v2 }
 0x179   : > { %1186 = vmax.xlane.f32.xlu1 %v2502_v10 }
 0x1e3   : > { %v1161_v60 = vpop.xlane.xlu1 %1160 }
 0x1e4   : > { %v1190_v27 = vsub.f32 %v2459_v14, %v1161_v60  ;;  %v1157_v41 = vpop.xlane.xlu0 %1156 }
 0x1e5   : > { %v1188_v62 = vsub.f32 %v2461_v18, %v1157_v41 }
 0x1e6   : > { %v1208_v16 = vmul.f32 1.442695, %v1190_v27 }
 0x1e7   : > { %v1204_v17 = vmul.f32 1.442695, %v1188_v62  ;;  %v1163_v19 = vpop.xlane.xlu1 %1162 }
 0x1e8   : > { %1932 = vpow2.f32 %v1208_v16  ;;  %v1191_v20 = vsub.f32 %v2463_v21, %v1163_v19  ;;  %v1159_v55 = vpop.xlane.xlu0 %1158 }
 0x1e9   : > { %v1189_v22 = vsub.f32 %v2467_v24, %v1159_v55  ;;  %1934 = vpow2.f32 %v1204_v17 }
 0x1ea   : > { %v1210_v57 = vmul.f32 1.442695, %v1191_v20 }
 0x1eb   : > { %v1206_v26 = vmul.f32 1.442695, %v1189_v22 }
 0x1ec   : > { %1936 = vpow2.f32 %v1210_v57  ;;  %v1165_v28 = vpop.xlane.xlu0 %1164 }
 0x1ed   : > { %v1192_v29 = vsub.f32 %v2473_v34, %v1165_v28  ;;  %1938 = vpow2.f32 %v1206_v26 }
 0x1ee   : > { %v1167_v14 = vpop.xlane.xlu1 %1166 }
 0x1ef   : > { %v1212_v30 = vmul.f32 1.442695, %v1192_v29  ;;  %v1193_v18 = vsub.f32 %v2476_v40, %v1167_v14 }
 0x1f0   : > { %v1169_v31 = vpop.xlane.xlu0 %1168 }
 0x1f1   : > { %1940 = vpow2.f32 %v1212_v30  ;;  %v1214_v32 = vmul.f32 1.442695, %v1193_v18  ;;  %v1194_v21 = vsub.f32 %v2480_v43, %v1169_v31 }
 0x1f2   : > { %v2525_v33 = vpop.eup %1932  ;;  %v1171_v24 = vpop.xlane.xlu1 %1170 }
 0x1f3   : > { %1942 = vpow2.f32 %v1214_v32  ;;  %v1216_v35 = vmul.f32 1.442695, %v1194_v21  ;;  %v1195_v7 = vsub.f32 %v2483_v46, %v1171_v24  ;;  %1240 = vadd.xlane.f32.xlu0 %v2525_v33  ;;  %v2529_v34 = vpop.eup %1934 }
 0x1f5   : > { %1944 = vpow2.f32 %v1216_v35  ;;  %v1218_v36 = vmul.f32 1.442695, %v1195_v7 }
 0x1f6   : > { %v2531_v37 = vpop.eup %1936 }
 0x1f7   : > { %1946 = vpow2.f32 %v1218_v36  ;;  %1242 = vadd.xlane.f32.xlu1 %v2531_v37  ;;  %1236 = vadd.xlane.f32.xlu0 %v2529_v34  ;;  %v1173_v38 = vpop.xlane.xlu0 %1172  ;;  %v2536_v43 = vpop.eup %1938 }
 0x1f8   : > { %v1196_v40 = vsub.f32 %v2488_v58, %v1173_v38 }
 0x1f9   : > { %v1175_v9 = vpop.xlane.xlu1 %1174 }
 0x1fa   : > { %v1220_v45 = vmul.f32 1.442695, %v1196_v40  ;;  %v1197_v46 = vsub.f32 %v2491_v61, %v1175_v9 }
 0x1fb   : > { %v2539_v47 = vpop.eup %1940  ;;  %1238 = vadd.xlane.f32.xlu1 %v2536_v43 }
 0x1fc   : > { %1948 = vpow2.f32 %v1220_v45  ;;  %v1222_v48 = vmul.f32 1.442695, %v1197_v46  ;;  %1244 = vadd.xlane.f32.xlu0 %v2539_v47  ;;  %v1181_v23 = vpop.xlane.xlu0 %1180 }
 0x1fd   : > { %v2543_v49 = vpop.eup %1942  ;;  %v1200_v50 = vsub.f32 %v2498_v42, %v1181_v23 }
 0x1fe   : > { %1950 = vpow2.f32 %v1222_v48  ;;  %v1183_v51 = vpop.xlane.xlu1 %1182 }
 0x1ff   : > { %v2546_v52 = vpop.eup %1944  ;;  %v1228_v25 = vmul.f32 1.442695, %v1200_v50  ;;  %v1201_v54 = vsub.f32 %v2505_v8, %v1183_v51  ;;  %1246 = vadd.xlane.f32.xlu1 %v2543_v49 }
 0x200   : > { %1248 = vadd.xlane.f32.xlu0 %v2546_v52  ;;  %v1177_v56 = vpop.xlane.xlu0 %1176 }
 0x201   : > { %v2551_v58 = vpop.eup %1946  ;;  %1952 = vpow2.f32 %v1228_v25  ;;  %v1230_v59 = vmul.f32 1.442695, %v1201_v54  ;;  %v1198_v61 = vsub.f32 %v2509_v15, %v1177_v56 }
 0x202   : > { %v1179_v63 = vpop.xlane.xlu1 %1178 }
 0x203   : > { %1954 = vpow2.f32 %v1230_v59  ;;  %v1224_v0 = vmul.f32 1.442695, %v1198_v61  ;;  %v1199_v1 = vsub.f32 %v2512_v53, %v1179_v63  ;;  %1250 = vadd.xlane.f32.xlu1 %v2551_v58 }
 0x204   : > { %v1185_v3 = vpop.xlane.xlu0 %1184 }
 0x205   : > { %1956 = vpow2.f32 %v1224_v0  ;;  %v1226_v4 = vmul.f32 1.442695, %v1199_v1  ;;  %v1202_v5 = vsub.f32 %v2494_v2, %v1185_v3 }
 0x206   : > { %v2557_v42 = vpop.eup %1948  ;;  %v1187_v39 = vpop.xlane.xlu1 %1186 }
 0x207   : > { %1958 = vpow2.f32 %v1226_v4  ;;  %v1232_v6 = vmul.f32 1.442695, %v1202_v5  ;;  %v1203_v44 = vsub.f32 %v2502_v10, %v1187_v39  ;;  %1252 = vadd.xlane.f32.xlu0 %v2557_v42 }
 0x208   : > { %v2561_v11 = vpop.eup %1950 }
 0x209   : > { %1960 = vpow2.f32 %v1232_v6  ;;  %v1234_v12 = vmul.f32 1.442695, %v1203_v44  ;;  %1254 = vadd.xlane.f32.xlu1 %v2561_v11 }
 0x20b   : > { %v2564_v8 = vpop.eup %1952  ;;  %1962 = vpow2.f32 %v1234_v12 }
 0x20c   : > { %1260 = vadd.xlane.f32.xlu0 %v2564_v8 }
 0x20d   : > { %v2567_v2 = vpop.eup %1954 }
 0x20e   : > { %1262 = vadd.xlane.f32.xlu1 %v2567_v2 }
 0x20f   : > { %v2570_v13 = vpop.eup %1956 }
 0x210   : > { %1256 = vadd.xlane.f32.xlu0 %v2570_v13 }
 0x211   : > { %v2573_v10 = vpop.eup %1958 }
 0x212   : > { %1258 = vadd.xlane.f32.xlu1 %v2573_v10 }
 0x213   : > { %v2576_v15 = vpop.eup %1960 }
 0x214   : > { %1264 = vadd.xlane.f32.xlu0 %v2576_v15 }
 0x215   : > { %v2579_v53 = vpop.eup %1962 }
 0x216   : > { %1266 = vadd.xlane.f32.xlu1 %v2579_v53 }
 0x280   : > { %v1241_v60 = vpop.xlane.xlu0 %1240 }
 0x281   : > { %1964 = vrcp.f32 %v1241_v60 }
 0x284   : > { %v1243_v27 = vpop.xlane.xlu1 %1242  ;;  %v1237_v41 = vpop.xlane.xlu0 %1236 }
 0x285   : > { %1966 = vrcp.f32 %v1243_v27 }
 0x286   : > { %1968 = vrcp.f32 %v1237_v41 }
 0x288   : > { %v1239_v62 = vpop.xlane.xlu1 %1238 }
 0x289   : > { %1970 = vrcp.f32 %v1239_v62  ;;  %v1245_v16 = vpop.xlane.xlu0 %1244 }
 0x28a   : > { %1972 = vrcp.f32 %v1245_v16 }
 0x28b   : > { %v1965_v19 = vpop.eup %1964 }
 0x28c   : > { %v1247_v17 = vpop.xlane.xlu1 %1246  ;;  %v1286_v22 = vmul.f32 %v1965_v19, %v2525_v33 }
 0x28d   : > { %1974 = vrcp.f32 %v1247_v17  ;;  %v1249_v20 = vpop.xlane.xlu0 %1248 }
 0x28e   : > { %1976 = vrcp.f32 %v1249_v20 }
 0x28f   : > { %v1967_v55 = vpop.eup %1966 }
 0x290   : > { %v1287_v57 = vmul.f32 %v1967_v55, %v2531_v37  ;;  %v1251_v26 = vpop.xlane.xlu1 %1250  ;;  %v1969_v28 = vpop.eup %1968 }
 0x291   : > { %1978 = vrcp.f32 %v1251_v26  ;;  %v1284_v30 = vmul.f32 %v1969_v28, %v2529_v34 }
 0x292   : > { %v1567_v29 = vpack.c.bf16 %v1287_v57, %v1286_v22 }
 0x293   : > { %v1971_v14 = vpop.eup %1970 }
 0x294   : > { %1599 = vst [vmem:[%s2587_s25 + $0x8] sm:$0xff] %v1567_v29   ;;  %v1285_v18 = vmul.f32 %v1971_v14, %v2536_v43  ;;  %v1253_v31 = vpop.xlane.xlu0 %1252  ;;  %v1973_v32 = vpop.eup %1972 }
 0x295   : > { %1980 = vrcp.f32 %v1253_v31  ;;  %v1288_v35 = vmul.f32 %v1973_v32, %v2539_v47 }
 0x296   : > { %v1562_v21 = vpack.c.bf16 %v1285_v18, %v1284_v30  ;;  %v1255_v33 = vpop.xlane.xlu1 %1254 }
 0x297   : > { %v1975_v24 = vpop.eup %1974  ;;  %1982 = vrcp.f32 %v1255_v33 }
 0x298   : > { %1563 = vst [vmem:[%s2587_s25] sm:$0xff] %v1562_v21   ;;  %v1289_v7 = vmul.f32 %v1975_v24, %v2543_v49  ;;  %v1977_v36 = vpop.eup %1976 }
 0x299   : > { %v1261_v37 = vpop.xlane.xlu0 %1260  ;;  %v1290_v9 = vmul.f32 %v1977_v36, %v2546_v52 }
 0x29a   : > { %v1572_v38 = vpack.c.bf16 %v1289_v7, %v1288_v35  ;;  %1984 = vrcp.f32 %v1261_v37 }
 0x29b   : > { %v1979_v34 = vpop.eup %1978  ;;  %v1263_v40 = vpop.xlane.xlu1 %1262 }
 0x29c   : > { %1600 = vst [vmem:[%s2587_s25 + $0x10] sm:$0xff] %v1572_v38   ;;  %v1291_v43 = vmul.f32 %v1979_v34, %v2551_v58  ;;  %1986 = vrcp.f32 %v1263_v40 }
 0x29d   : > { %v1257_v45 = vpop.xlane.xlu0 %1256 }
 0x29e   : > { %v1577_v46 = vpack.c.bf16 %v1291_v43, %v1290_v9  ;;  %1988 = vrcp.f32 %v1257_v45 }
 0x29f   : > { %v1981_v47 = vpop.eup %1980  ;;  %v1259_v48 = vpop.xlane.xlu1 %1258 }
 0x2a0   : > { %1601 = vst [vmem:[%s2587_s25 + $0x18] sm:$0xff] %v1577_v46   ;;  %1990 = vrcp.f32 %v1259_v48  ;;  %v1292_v50 = vmul.f32 %v1981_v47, %v2557_v42 }
 0x2a1   : > { %v1983_v23 = vpop.eup %1982  ;;  %v1265_v49 = vpop.xlane.xlu0 %1264 }
 0x2a2   : > { %v1293_v51 = vmul.f32 %v1983_v23, %v2561_v11  ;;  %1992 = vrcp.f32 %v1265_v49 }
 0x2a3   : > { %v1267_v52 = vpop.xlane.xlu1 %1266 }
 0x2a4   : > { %v1985_v25 = vpop.eup %1984  ;;  %v1582_v54 = vpack.c.bf16 %v1293_v51, %v1292_v50  ;;  %1994 = vrcp.f32 %v1267_v52 }
 0x2a5   : > { %v1296_v58 = vmul.f32 %v1985_v25, %v2564_v8 }
 0x2a6   : > { %v1987_v56 = vpop.eup %1986  ;;  %1602 = vst [vmem:[%s2587_s25 + $0x20] sm:$0xff] %v1582_v54  }
 0x2a7   : > { %v1297_v59 = vmul.f32 %v1987_v56, %v2567_v2 }
 0x2a8   : > { %v1989_v61 = vpop.eup %1988 }
 0x2a9   : > { %v1592_v63 = vpack.c.bf16 %v1297_v59, %v1296_v58  ;;  %v1294_v1 = vmul.f32 %v1989_v61, %v2570_v13 }
 0x2aa   : > { %v1991_v0 = vpop.eup %1990 }
 0x2ab   : > { %1604 = vst [vmem:[%s2587_s25 + $0x30] sm:$0xff] %v1592_v63   ;;  %v1295_v3 = vmul.f32 %v1991_v0, %v2573_v10 }
 0x2ac   : > { %v1993_v4 = vpop.eup %1992 }
 0x2ad   : > { %v1587_v5 = vpack.c.bf16 %v1295_v3, %v1294_v1  ;;  %v1298_v39 = vmul.f32 %v1993_v4, %v2576_v15 }
 0x2ae   : > { %v1995_v42 = vpop.eup %1994 }
 0x2af   : > { %1603 = vst [vmem:[%s2587_s25 + $0x28] sm:$0xff] %v1587_v5   ;;  %v1299_v6 = vmul.f32 %v1995_v42, %v2579_v53 }
 0x2b1   : > { %v1597_v44 = vpack.c.bf16 %v1299_v6, %v1298_v39 }
 0x2b3   : > { %1605 = vst [vmem:[%s2587_s25 + $0x38] sm:$0xff] %v1597_v44  }
 0x2b4   : > { %2009 = shalt.err (!%p2006_p3)
}
 0x2b5   : > { %s2010_s8 = scalar_lea.hbm %s2615_s30, 1024  ;;  %s2014_s17 = scalar_lea.hbm %s2666_s3, 2048 }
 0x2b6   : > { %p2011_p4 = scmp.ne.s32.totalorder %s2615_s30, %s2010_s8  ;;  %p2015_p9 = scmp.lt.u32.totalorder %s2615_s30, %s2666_s3 }
 0x2b7   : > { %p2016_p10 = scmp.lt.u32.totalorder %s2014_s17, %s2010_s8  ;;  %p2018_p12 = scmp.lt.u32.totalorder %s2010_s8, %s2615_s30 }
 0x2b8   : > { %p2012_p7 = pnand %p2011_p4, %p2121_p5 }
 0x2b9   : > { %p2017_p11 = por %p2016_p10, %p2015_p9 }
 0x2ba   : > { %p2013_p8 = pneg %p2012_p7 }
 0x2bb   : > { %p2019_p13 = por %p2018_p12, %p2017_p11 }
 0x2bd   : > { %p2020_p0 = pnand %p2019_p13, %p2013_p8 }
 0x2bf   : > { %2023 = shalt.err (!%p2020_p0)
}
 0x2c0   : > { %s2061_s7 = smov 64   ;;  %s2062_s24 = smov 4  }
 0x2c1   : > { %1842 = dma.vmem_to_hbm [thread:$0]  (%p2121_p5), %s2617_s27, 1024, %s2615_s30, %s2622_s16, %s2061_s7, %s2061_s7, %s2062_s24  }
 0x2c2 PF: > { %p1848_p1 = scmp.ge.s32.totalorder %s2058_s15, 2  ;;  %s1409_s25 = sand.u32 1, %s2046_s12  }
 0x2c3   : > { %s1410_s26 = scalar_lea.sflag [#allocation3], %s1409_s25 }
 0x2c4   : > { %p1845_p2 = pnand %p1848_p1, %p2125_p6 }
 0x2c6   : > { %2041 = dma.done.wait (!%p1845_p2), %s1410_s26, 1024  }
 0x2c7   : > { %2043 = vsyncadd (!%p1845_p2), %s1410_s26, 4294966272  ;;  %p13_p3 = scmp.ge.s32.totalorder %s2108_s18, 4   ;;  %s2669_s12 = smov %s2050_s13 }
 0x2c8   : > { %s2670_s13 = smov %s2054_s14  ;;  %s2671_s14 = smov %s2119_s21 }
 0x2c9   : > { %s2672_s15 = smov %s2108_s18  ;;  %15 = sbr.rel (!%p13_p3) target bundleno = 3 (0x3), region = 67 }
 0x2d0   :  { %1415 = vsyncpa [#allocation3], 1 }
 0x2d1   :  { %1417 = vsyncpa [#allocation3 + $0x1], 1 }

</bundles_post_ra>
